<compile_context>
chip_gen: v7x
topology: tpu7x:2x2x1
jax: 0.10.0
libtpu: 0.0.40
codegen_flags: <defaults>
</compile_context>

<pallas_src>
import functools

import jax
import jax.numpy as jnp
from jax.experimental import pallas as pl
from jax.experimental.pallas import tpu as pltpu


# ----------------------------- kernels -------------------------------------


def _bn_stats_kernel(x_ref, sum_ref, sumsq_ref):
    """Per-batch-block partial per-channel sum and sum-of-squares."""
    @pl.when(pl.program_id(1) == 0)
    def _():
        sum_ref[...] = jnp.zeros_like(sum_ref)
        sumsq_ref[...] = jnp.zeros_like(sumsq_ref)

    x = x_ref[...].astype(jnp.float32)                       # (nb, C, tile_l)
    # Lane reduce: the tile_l/128 vregs are summed on the VPU, one cross-lane
    # collapse per sublane tile remains; hidden under the HBM DMA.
    s = jnp.sum(x, axis=-1, keepdims=True)                   # (nb, C, 1)
    s2 = jnp.sum(x * x, axis=-1, keepdims=True)              # (nb, C, 1)
    sum_ref[...] += jnp.sum(s, axis=0, keepdims=True)        # (1, C, 1)
    sumsq_ref[...] += jnp.sum(s2, axis=0, keepdims=True)     # (1, C, 1)


def _bn_norm_kernel(x_ref, psum_ref, psumsq_ref, gain_ref, bias_ref, o_ref,
                    *, inv_count, eps):
    """Fused finalize (mean/var/scale/shift) + y = x*scale + shift."""
    # Tiny per-channel finalize on resident blocks: a few vregs of VPU work and
    # C rsqrt on the EUP slot per tile, fully hidden under the x DMA.
    sums = jnp.sum(psum_ref[...], axis=0)                    # (C, 1)
    sumsqs = jnp.sum(psumsq_ref[...], axis=0)                # (C, 1)
    mean = sums * inv_count
    var = jnp.maximum(sumsqs * inv_count - mean * mean, 0.0)
    inv_std = jax.lax.rsqrt(var + eps)
    scale = gain_ref[...] * inv_std                          # (C, 1)
    shift = bias_ref[...] - mean * scale                     # (C, 1)

    x = x_ref[...].astype(jnp.float32)                       # (nb, C, tile_l)
    o_ref[...] = (x * scale + shift).astype(o_ref.dtype)


# ----------------------------- tiling --------------------------------------


def _hw_budgets():
    """(per-tile byte budget, vmem_limit_bytes) tuned per TPU generation."""
    try:
        kind = jax.devices()[0].device_kind.lower()
    except Exception:
        kind = ""
    if "v5" in kind or "v6" in kind:
        # 128 MiB physical VMEM: 8 MiB tiles -> ~32 MiB pass-2 peak (in+out, 2x buf).
        return 8 << 20, 64 << 20
    # v7x (64 MiB VMEM / TC) and unknown: 6 MiB tiles -> ~24 MiB peak.
    return 6 << 20, 40 << 20


def _pick_tiles(n, c, length, itemsize, budget_bytes):
    """Lane-dense tile_l (multiple of 128 dividing length) and batch block nb."""
    sub = max(8, 32 // itemsize)              # sublane packing: 8 f32, 16 bf16, ...
    c_pad = -(-c // sub) * sub                # sublane-padded channels in VMEM
    row_bytes = c_pad * itemsize
    max_tl = max(128, (budget_bytes // row_bytes) // 128 * 128)
    tile_l = 128
    for cand in range(min(length, max_tl), 127, -128):
        if length % cand == 0:
            tile_l = cand
            break
    # Small-L shapes: block several batch elements per step (fewer ~0.35us grid
    # steps, larger DMAs), but keep >= 2 batch blocks so pass 1 can shard across
    # v7x's two TensorCores.
    cap = max(1, int(budget_bytes // (row_bytes * tile_l)))
    if n >= 2:
        cap = min(cap, n // 2)
    nb = 1
    for cand in range(min(n, cap), 0, -1):
        if n % cand == 0:
            nb = cand
            break
    return tile_l, nb


# ----------------------------- wrapper --------------------------------------


def batch_norm_pallas(x_nchw, gain, bias, eps=1e-5):
    """Training-mode batch norm matching F.batch_norm(x, ..., training=True)."""
    n, c, h, w = x_nchw.shape
    L = h * w
    L_pad = -(-L // 128) * 128
    x3d = x_nchw.reshape(n, c, L)            # contiguous reshape, no transpose
    if L_pad != L:
        # Zero padding is stats-neutral; real count n*L is used for the mean and
        # padded lanes are sliced off the output. Keeps blocks lane-dense and
        # within the VMEM budget for any H*W.
        x3d = jnp.pad(x3d, ((0, 0), (0, 0), (0, L_pad - L)))

    itemsize = x3d.dtype.itemsize
    tile_budget, vmem_limit = _hw_budgets()
    tile_l, nb = _pick_tiles(n, c, L_pad, itemsize, tile_budget)
    nbb = n // nb
    n_l = L_pad // tile_l

    gain2d = gain.reshape(c, 1).astype(jnp.float32)
    bias2d = bias.reshape(c, 1).astype(jnp.float32)

    x_bytes = n * c * L_pad * itemsize
    stat_bytes = 2 * nbb * c * 4

    # ---- pass 1: per-batch-block per-channel partial sum / sum-of-squares ----
    psums, psumsqs = pl.pallas_call(
        _bn_stats_kernel,
        out_shape=(jax.ShapeDtypeStruct((nbb, c, 1), jnp.float32),
                   jax.ShapeDtypeStruct((nbb, c, 1), jnp.float32)),
        grid_spec=pltpu.PrefetchScalarGridSpec(
            num_scalar_prefetch=0,
            grid=(nbb, n_l),
            in_specs=[pl.BlockSpec((nb, c, tile_l), lambda i, j: (i, 0, j))],
            out_specs=(pl.BlockSpec((1, c, 1), lambda i, j: (i, 0, 0)),
                       pl.BlockSpec((1, c, 1), lambda i, j: (i, 0, 0))),
        ),
        compiler_params=pltpu.CompilerParams(
            dimension_semantics=("parallel", "arbitrary"),
            vmem_limit_bytes=vmem_limit),
        cost_estimate=pl.CostEstimate(
            flops=3 * n * c * L_pad,
            transcendentals=0,
            bytes_accessed=x_bytes + stat_bytes),
    )(x3d)

    # ---- pass 2: fused finalize + normalize (1 read + 1 write of x) ----
    norm_kernel = functools.partial(
        _bn_norm_kernel, inv_count=1.0 / float(n * L), eps=float(eps))
    out3d = pl.pallas_call(
        norm_kernel,
        out_shape=jax.ShapeDtypeStruct((n, c, L_pad), x3d.dtype),
        grid_spec=pltpu.PrefetchScalarGridSpec(
            num_scalar_prefetch=0,
            grid=(nbb, n_l),
            in_specs=[pl.BlockSpec((nb, c, tile_l), lambda i, j: (i, 0, j)),
                      pl.BlockSpec((nbb, c, 1), lambda i, j: (0, 0, 0)),
                      pl.BlockSpec((nbb, c, 1), lambda i, j: (0, 0, 0)),
                      pl.BlockSpec((c, 1), lambda i, j: (0, 0)),
                      pl.BlockSpec((c, 1), lambda i, j: (0, 0))],
            out_specs=pl.BlockSpec((nb, c, tile_l), lambda i, j: (i, 0, j)),
        ),
        compiler_params=pltpu.CompilerParams(
            dimension_semantics=("parallel", "parallel"),
            vmem_limit_bytes=vmem_limit),
        cost_estimate=pl.CostEstimate(
            flops=2 * n * c * L_pad,
            transcendentals=c * nbb * n_l,
            bytes_accessed=2 * x_bytes + stat_bytes + 2 * c * 4),
    )(x3d, psums, psumsqs, gain2d, bias2d)

    if L_pad != L:
        out3d = out3d[:, :, :L]
    return out3d.reshape(n, c, h, w)


if __name__ == "__main__":
    key = jax.random.PRNGKey(0)
    N, C, H, W = 2, 4, 16, 16
    x = jax.random.normal(key, (N, C, H, W), dtype=jnp.float32)

    # Parameter init matching BN.__init__: gain=ones, bias=zeros.
    gain = jnp.ones((C,), dtype=jnp.float32)
    bias = jnp.zeros((C,), dtype=jnp.float32)
    # TODO(synk): running-stat buffer update (momentum EMA on stored_mean/var) is
    # a stateful side effect of F.batch_norm, not part of the returned tensor;
    # omitted in this forward-only kernel.

    out = batch_norm_pallas(x, gain, bias, eps=1e-5)
    out = jax.block_until_ready(out)

    # Pure-JAX reference (training-mode batch norm).
    mean = jnp.mean(x, axis=(0, 2, 3), keepdims=True)
    var = jnp.mean((x - mean) ** 2, axis=(0, 2, 3), keepdims=True)
    ref = (x - mean) / jnp.sqrt(var + 1e-5) * gain.reshape(1, C, 1, 1) \
          + bias.reshape(1, C, 1, 1)
    assert jnp.max(jnp.abs(out - ref)) < 1e-4, "mismatch vs reference"

    print("KERNEL_OK")
</pallas_src>

<mosaic_0001>
module attributes {stable_mosaic.version = 11 : i64} {
  func.func @_bn_stats_kernel(%arg0: i32, %arg1: i32, %arg2: memref<1x4x256xf32, #tpu.memory_space<vmem>>, %arg3: memref<1x4x1xf32, #tpu.memory_space<vmem>>, %arg4: memref<1x4x1xf32, #tpu.memory_space<vmem>>) attributes {dimension_semantics = [#tpu.dimension_semantics<parallel>, #tpu.dimension_semantics<arbitrary>], iteration_bounds = array<i64: 2, 1>, scalar_prefetch = 0 : i64, scratch_operands = 0 : i64, tpu.core_type = #tpu.core_type<tc>, window_params = [{transform_indices = @transform_0, window_bounds = array<i64: 1, 4, 256>}, {transform_indices = @transform_1, window_bounds = array<i64: 1, 4, 1>}, {transform_indices = @transform_2, window_bounds = array<i64: 1, 4, 1>}]} {
    %c0_i32 = arith.constant 0 : i32
    %0 = arith.cmpi eq, %arg1, %c0_i32 : i32
    %1 = arith.extui %0 : i1 to i32
    %c0_i32_0 = arith.constant 0 : i32
    %2 = arith.cmpi ne, %1, %c0_i32_0 : i32
    scf.if %2 {
      %cst_18 = arith.constant 0.000000e+00 : f32
      %19 = vector.broadcast %cst_18 : f32 to vector<1x4x1xf32>
      %c0_19 = arith.constant 0 : index
      %c0_20 = arith.constant 0 : index
      %c0_21 = arith.constant 0 : index
      %20 = vector.load %arg3[%c0_19, %c0_20, %c0_21] : memref<1x4x1xf32, #tpu.memory_space<vmem>>, vector<1x4x1xf32>
      tpu.vector_store %arg3[%c0_19, %c0_20, %c0_21], %19 {strides = array<i32>} : memref<1x4x1xf32, #tpu.memory_space<vmem>>, vector<1x4x1xf32>,
      %cst_22 = arith.constant 0.000000e+00 : f32
      %21 = vector.broadcast %cst_22 : f32 to vector<1x4x1xf32>
      %c0_23 = arith.constant 0 : index
      %c0_24 = arith.constant 0 : index
      %c0_25 = arith.constant 0 : index
      %22 = vector.load %arg4[%c0_23, %c0_24, %c0_25] : memref<1x4x1xf32, #tpu.memory_space<vmem>>, vector<1x4x1xf32>
      tpu.vector_store %arg4[%c0_23, %c0_24, %c0_25], %21 {strides = array<i32>} : memref<1x4x1xf32, #tpu.memory_space<vmem>>, vector<1x4x1xf32>,
    } else {
    }
    %c0 = arith.constant 0 : index
    %c0_1 = arith.constant 0 : index
    %c0_2 = arith.constant 0 : index
    %3 = vector.load %arg2[%c0, %c0_1, %c0_2] : memref<1x4x256xf32, #tpu.memory_space<vmem>>, vector<1x4x256xf32>
    %cst = arith.constant dense<0.000000e+00> : vector<1x4xf32>
    %4 = vector.multi_reduction <add>, %3, %cst [2] : vector<1x4x256xf32> to vector<1x4xf32>
    %5 = vector.shape_cast %4 : vector<1x4xf32> to vector<1x4x1xf32>
    %6 = arith.mulf %3, %3 : vector<1x4x256xf32>
    %cst_3 = arith.constant dense<0.000000e+00> : vector<1x4xf32>
    %7 = vector.multi_reduction <add>, %6, %cst_3 [2] : vector<1x4x256xf32> to vector<1x4xf32>
    %8 = vector.shape_cast %7 : vector<1x4xf32> to vector<1x4x1xf32>
    %c0_4 = arith.constant 0 : index
    %c0_5 = arith.constant 0 : index
    %c0_6 = arith.constant 0 : index
    %9 = vector.load %arg3[%c0_4, %c0_5, %c0_6] : memref<1x4x1xf32, #tpu.memory_space<vmem>>, vector<1x4x1xf32>
    %cst_7 = arith.constant dense<0.000000e+00> : vector<4x1xf32>
    %10 = vector.multi_reduction <add>, %5, %cst_7 [0] : vector<1x4x1xf32> to vector<4x1xf32>
    %11 = vector.shape_cast %10 : vector<4x1xf32> to vector<1x4x1xf32>
    %12 = arith.addf %9, %11 : vector<1x4x1xf32>
    %c0_8 = arith.constant 0 : index
    %c0_9 = arith.constant 0 : index
    %c0_10 = arith.constant 0 : index
    %13 = vector.load %arg3[%c0_8, %c0_9, %c0_10] : memref<1x4x1xf32, #tpu.memory_space<vmem>>, vector<1x4x1xf32>
    tpu.vector_store %arg3[%c0_8, %c0_9, %c0_10], %12 {strides = array<i32>} : memref<1x4x1xf32, #tpu.memory_space<vmem>>, vector<1x4x1xf32>,
    %c0_11 = arith.constant 0 : index
    %c0_12 = arith.constant 0 : index
    %c0_13 = arith.constant 0 : index
    %14 = vector.load %arg4[%c0_11, %c0_12, %c0_13] : memref<1x4x1xf32, #tpu.memory_space<vmem>>, vector<1x4x1xf32>
    %cst_14 = arith.constant dense<0.000000e+00> : vector<4x1xf32>
    %15 = vector.multi_reduction <add>, %8, %cst_14 [0] : vector<1x4x1xf32> to vector<4x1xf32>
    %16 = vector.shape_cast %15 : vector<4x1xf32> to vector<1x4x1xf32>
    %17 = arith.addf %14, %16 : vector<1x4x1xf32>
    %c0_15 = arith.constant 0 : index
    %c0_16 = arith.constant 0 : index
    %c0_17 = arith.constant 0 : index
    %18 = vector.load %arg4[%c0_15, %c0_16, %c0_17] : memref<1x4x1xf32, #tpu.memory_space<vmem>>, vector<1x4x1xf32>
    tpu.vector_store %arg4[%c0_15, %c0_16, %c0_17], %17 {strides = array<i32>} : memref<1x4x1xf32, #tpu.memory_space<vmem>>, vector<1x4x1xf32>,
    return
  }
  func.func @transform_0(%arg0: i32, %arg1: i32) -> (i32, i32, i32) {
    %c0_i32 = arith.constant 0 : i32
    %c0_i32_0 = arith.constant 0 : i32
    return %arg0, %c0_i32, %arg1 : i32, i32, i32
  }
  func.func @transform_1(%arg0: i32, %arg1: i32) -> (i32, i32, i32) {
    %c0_i32 = arith.constant 0 : i32
    %c0_i32_0 = arith.constant 0 : i32
    %c0_i32_1 = arith.constant 0 : i32
    return %arg0, %c0_i32, %c0_i32_0 : i32, i32, i32
  }
  func.func @transform_2(%arg0: i32, %arg1: i32) -> (i32, i32, i32) {
    %c0_i32 = arith.constant 0 : i32
    %c0_i32_0 = arith.constant 0 : i32
    %c0_i32_1 = arith.constant 0 : i32
    return %arg0, %c0_i32, %c0_i32_0 : i32, i32, i32
  }
}

</mosaic_0001>

<bundles_post_ra>
// kernel: tpu_custom_call.1
= control target key start
LH: loop header
LB: loop body
LE: loop exit
PB: predicated region body
PF: predicated region fallthrough
CT: control target
= control target key end

     0   :  { %8 = vsyncpa [#allocation3], 0  ;;  %s632_s0 = inlined_call_operand.hbm [shape: f32[2,4,256], index: 0, kind: input, shape index: {}]   ;;  %s633_s1 = inlined_call_operand.vmem [shape: f32[2,4,1], index: 1, kind: output, shape index: {0}]   ;;  %s634_s2 = inlined_call_operand.vmem [shape: f32[2,4,1], index: 2, kind: output, shape index: {1}]  }
   0x1   :  { %10 = vsyncpa [#allocation3 + $0x1], 0  ;;  %s500_s9 = smov 0   ;;  %s502_s10 = smov 0  }
   0x2   :  { %s504_s11 = smov 0   ;;  %s506_s12 = smov 0  }
   0x3   :  { %s508_s13 = smov 0   ;;  %s510_s14 = smov 0  }
   0x4 LB: > { %s330_s15 = sadd.s32 4294967295, %s481_s14   ;;  %s28_s16 = sadd.s32 1, %s477_s13  ;;  %s481_s14 = sphi %s510_s14, %s16_s14   ;;  %s477_s13 = sphi %s508_s13, %s644_s13   ;;  %s473_s12 = sphi %s506_s12, %s643_s12   ;;  %s469_s11 = sphi %s504_s11, %s642_s11   ;;  %s465_s10 = sphi %s502_s10, %s641_s10   ;;  %s461_s9 = sphi %s500_s9, %s640_s9  }
   0x5   : > { %p30_p0 = scmp.ge.s32.totalorder %s28_s16, 2  ;;  %s37_s17 = sadd.s32 1, %s469_s11 }
   0x6   : > { %p44_p1 = scmp.ne.s32.totalorder %s469_s11, %s465_s10  ;;  %p45_p2 = scmp.eq.s32.totalorder %s481_s14, 0 }
   0x7   : > { %s646_s16 = smov (%p30_p0, %s28_s16), 0  ;;  %p50_p4 = scmp.ne.s32.totalorder %s465_s10, %s461_s9 }
   0x8   : > { %p536_p3 = por %p45_p2, %p44_p1  ;;  %s32_s19 = ssub.s32 %s477_s13, %s646_s16 }
   0x9   : > { %p51_p5 = scmp.eq.s32.totalorder %s330_s15, 0  ;;  %p35_p6 = scmp.eq.s32.totalorder %s32_s19, 0 }
   0xa   : > { %p350_p8 = scmp.lt.s32.totalorder %s481_s14, 2  ;;  %s126_s22 = sand.u32 1, %s469_s11  }
   0xb   : > { %p543_p7 = por %p51_p5, %p50_p4  ;;  %s343_s23 = sshll.u32 %s477_s13, 7 }
   0xc   : > { %s549_s21 = scalar_select %p35_p6, %s469_s11, %s37_s17  }
   0xd   : > { %s334_s24 = sshll.u32 %s126_s22, 3  ;;  %s556_s27 = scalar_lea.hbm %s632_s0, %s343_s23 }
   0xe   : > { %s130_s28 = scalar_lea.vmem [#allocation2], %s334_s24  ;;  %p560_p9 = pnand %p350_p8, %p536_p3 }
   0xf   : > { %s140_s29 = sshll.u32 %s130_s28, 4  ;;  %s127_s3 = scalar_lea.sflag [#allocation3], %s126_s22  ;;  %s564_s29 = int_to_ptr.vmem [resolvable:$true] %s140_s29 }
  0x10   : > { %s401_s4 = scalar_lea.hbm %s556_s27, 128  ;;  %p403_p13 = pneg %p560_p9 }
  0x11   : > { %p402_p12 = scmp.ne.s32.totalorder %s556_s27, %s401_s4  ;;  %s406_s7 = scalar_lea.hbm %s632_s0, 256 }
  0x12   : > { %p407_p2 = scmp.lt.u32.totalorder %s556_s27, %s632_s0  ;;  %p408_p3 = scmp.lt.u32.totalorder %s406_s7, %s401_s4 }
  0x13   : > { %p404_p0 = pnand %p403_p13, %p402_p12  ;;  %p410_p5 = scmp.lt.u32.totalorder %s401_s4, %s556_s27 }
  0x14   : > { %p409_p4 = por %p408_p3, %p407_p2 }
  0x15   : > { %p405_p1 = pneg %p404_p0 }
  0x16   : > { %p411_p6 = por %p410_p5, %p409_p4 }
  0x18   : > { %p412_p8 = pnand %p411_p6, %p405_p1 }
  0x1a   : > { %415 = shalt.err (!%p412_p8)
}
  0x1b   : > { %s416_s15 = scalar_lea.vmem %s564_s29, 128  ;;  %s483_s17 = smov [#allocation2]  }
  0x1c   : > { %p417_p12 = scmp.ne.s32.totalorder %s564_s29, %s416_s15  ;;  %s421_s18 = sshll.u32 %s483_s17, 4  ;;  %s422_s18 = int_to_ptr.vmem [resolvable:$false] %s421_s18 }
  0x1d   : > { %s423_s19 = scalar_lea.vmem %s422_s18, 256  ;;  %p424_p11 = scmp.lt.s32.totalorder %s564_s29, %s422_s18 }
  0x1e   : > { %p419_p0 = pnand %p417_p12, %p403_p13  ;;  %p425_p2 = scmp.lt.s32.totalorder %s423_s19, %s416_s15 }
  0x20   : > { %p420_p10 = pneg %p419_p0  ;;  %p426_p3 = por %p425_p2, %p424_p11 }
  0x22   : > { %p427_p4 = pnand %p426_p3, %p420_p10 }
  0x24   : > { %430 = shalt.err (!%p427_p4)
}
  0x25   : > { %349 = dma.hbm_to_vmem [thread:$0]  (!%p560_p9), %s556_s27, 128, %s564_s29, %s127_s3  }
  0x26   : > { %p638_p1 = scmp.lt.s32.totalorder %s481_s14, 3  ;;  %p639_p5 = scmp.ge.s32.totalorder %s481_s14, 1 }
  0x28   : > { %p146_p13 = pnand %p639_p5, %p638_p1 }
  0x29   : > { %s151_s22 = sand.u32 (!%p146_p13), 1, %s465_s10  }
  0x2a   : > { %149 = sbr.rel (%p146_p13) target bundleno = 205 (0xcd), region = 24  ;;  %s338_s23 = sshll.u32 (!%p146_p13), %s151_s22, 3 }
  0x2b   : > { %s152_s24 = scalar_lea.sflag (!%p146_p13), [#allocation3], %s151_s22  ;;  %s155_s25 = scalar_lea.vmem (!%p146_p13), [#allocation2], %s338_s23 }
  0x31   : > { %456 = dma.done.wait (%p543_p7), %s152_s24, 128  }
  0x32   : > { %458 = vsyncadd (%p543_p7), %s152_s24, 4294967168  ;;  %p180_p10 = scmp.lt.s32.totalorder %s473_s12, 1  ;;  %vm192_vm0 = vcmask 3072   ;;  %vm199_vm1 = vcmask 1043456   ;;  %v484_v0 = vmov 0.0   ;;  %v195_v1 = vld [vmem:[%s155_s25] sm:$0xff] }
  0x33   : > { %v197_v2 = vcombine.high %v195_v1, %v195_v1  ;;  %v200_v3 = vsel %vm199_vm1, %v195_v1, 0.0  ;;  %v205_v4 = vmul.f32 %v195_v1, %v195_v1 }
  0x34   : > { %s648_s12 = smov (!%p180_p10, %s473_s12), 1 }
  0x35   : > { %s339_s26 = sshll.u32 %s648_s12, 2  ;;  %v201_v5 = vsel %vm199_vm1, %v197_v2, 0.0  ;;  %v207_v6 = vcombine.high %v205_v4, %v205_v4  ;;  %v209_v7 = vsel %vm199_vm1, %v205_v4, 0.0 }
  0x36   : > { %s183_s29 = scalar_lea.vmem %s633_s1, %s339_s26  ;;  %v202_v8 = vadd.f32 %v201_v5, %v200_v3  ;;  %s187_s30 = scalar_lea.vmem %s634_s2, %s339_s26 }
  0x37   : > { %193 = vst.msk [vmem:[%s183_s29] sm:$0xf] %vm192_vm0, %v484_v0  ;;  %v210_v9 = vsel %vm199_vm1, %v207_v6, 0.0  ;;  %194 = vst.msk [vmem:[%s187_s30] sm:$0xf] %vm192_vm0, %v484_v0 }
  0x38   : > { %203 = vadd.xlane.f32.xlu0 %v202_v8  ;;  %v211_v10 = vadd.f32 %v210_v9, %v209_v7 }
  0x3c   : > { %212 = vadd.xlane.f32.xlu0 %v211_v10 }
  0x3e   : > { %v214_v11 = vld [vmem:[%s183_s29] sm:$0xf] }
  0x3f   : > { %v219_v14 = vld [vmem:[%s187_s30] sm:$0xf] }
  0xc5   : > { %v204_v12 = vpop.xlane.xlu0 %203 }
  0xc6   : > { %v216_v13 = vadd.f32 %v214_v11, %v204_v12 }
  0xc8   : > { %218 = vst.msk [vmem:[%s183_s29] sm:$0xf] %vm192_vm0, %v216_v13 }
  0xc9   : > { %v213_v15 = vpop.xlane.xlu0 %212 }
  0xca   : > { %v221_v16 = vadd.f32 %v219_v14, %v213_v15 }
  0xcc   : > { %222 = vst.msk [vmem:[%s187_s30] sm:$0xf] %vm192_vm0, %v221_v16 }
  0xcd PF: > { %s16_s14 = sadd.s32 1, %s481_s14   ;;  %s640_s9 = smov %s465_s10 }
  0xce   : > { %p13_p7 = scmp.ge.s32.totalorder %s16_s14, 4   ;;  %s641_s10 = smov %s469_s11 }
  0xcf   : > { %s642_s11 = smov %s549_s21  ;;  %s643_s12 = smov %s477_s13 }
  0xd0   : > { %s644_s13 = smov %s646_s16  ;;  %15 = sbr.rel (!%p13_p7) target bundleno = 4 (0x4), region = 80 }
  0xd7   :  { %256 = vsyncpa [#allocation3], 1 }
  0xd8   :  { %258 = vsyncpa [#allocation3 + $0x1], 1 }

</bundles_post_ra>
